<compile_context>
chip_gen: v5e
topology: v5e:2x2
jax: 0.10.0
libtpu: 0.0.40
codegen_flags: <defaults>
</compile_context>

<pallas_src>
import math
import numpy as np
import jax
import jax.numpy as jnp
from jax.experimental import pallas as pl
from jax.experimental.pallas import tpu as pltpu


# -----------------------------------------------------------------------------
# calculate_theta2 (Beta-wavelet polynomial coefficients) without sympy/scipy:
# thetas[i][j] = coeff of x^j in (x/2)^i (1 - x/2)^(d-i) / B(i+1, d+1-i)
# -----------------------------------------------------------------------------
def calculate_theta2(d):
    thetas = []
    for i in range(d + 1):
        inv_beta = math.factorial(d + 1) / (math.factorial(i) * math.factorial(d - i))
        coeffs = [0.0] * (d + 1)
        for m in range(i, d + 1):
            c = math.comb(d - i, m - i) * ((-1.0) ** (m - i)) / (2.0 ** m)
            coeffs[m] = c * inv_beta
        thetas.append(coeffs)
    return thetas


# -----------------------------------------------------------------------------
# Fused Pallas kernel: per-relation MLP + lane-dense PolyConv bank + linear3
# -----------------------------------------------------------------------------
def _make_bwgnn_kernel(K, h_feats, leaky_slope=0.01):
    H = h_feats

    def kernel(feat_ref, w1_ref, b1_ref, w2_ref, b2_ref, a_ref, dinv_ref,
               w3_ref, b3_ref, out_ref):
        # ---- per-relation feature MLP (linear1_dict / linear2_dict) ----------
        x = feat_ref[0]                                                   # (N, IN)
        h = jnp.dot(x, w1_ref[0], preferred_element_type=jnp.float32) + b1_ref[0]
        h = jnp.maximum(h, leaky_slope * h)                               # LeakyReLU
        # TODO(synk): dropout(0.5) -> identity (eval mode)

        # W2/b2 are lane-tiled K times in the wrapper, so this matmul directly
        # produces the lane-dense (N, K*H) "replicated h" that seeds all K
        # PolyConv branches (block j will become L^j h below).
        z = jnp.dot(h, w2_ref[0], preferred_element_type=jnp.float32) + b2_ref[0]
        z = jnp.maximum(z, leaky_slope * z)                               # (N, K*H)

        # ---- PolyConv bank: Laplacian powers, all K blocks at 128-lane width --
        a = a_ref[0].astype(jnp.bfloat16)                 # int8 0/1 -> bf16 (exact)
        dinv = jnp.broadcast_to(dinv_ref[0], z.shape)     # hoisted (N, K*H) broadcast
        lane = jax.lax.broadcasted_iota(jnp.int32, z.shape, 1)

        for t in range(1, K):
            # unnLaplacian step on the still-active blocks (j >= t):
            #   p <- p - D^{-1/2} A D^{-1/2} p        (A[dst, src])
            # bf16 x bf16 MXU matmul with f32 accumulation.
            agg = jnp.dot(a, (z * dinv).astype(jnp.bfloat16),
                          preferred_element_type=jnp.float32)
            z = jnp.where(lane >= t * H, z - agg * dinv, z)
        # now block j of z == L^j h  (p_j), j = 0..K-1

        # ---- linear3 over concat of conv outputs ------------------------------
        # theta coefficients were folded into w3_eff in the wrapper, so this is
        # a single lane-dense (N, K*H) @ (K*H, H) matmul.
        out = jnp.dot(z, w3_ref[...], preferred_element_type=jnp.float32) + b3_ref[...]
        out_ref[0] = out

    return kernel


def bwgnn_hetero_forward(feats, adjs_i8, dinvs, params, thetas, slope=0.01):
    """feats:(R,N,IN) f32, adjs_i8:(R,N,N) int8 0/1, dinvs:(R,N,1) f32."""
    R, N, IN = feats.shape
    H = params["w1"].shape[-1]
    K = len(thetas)
    KH = K * H

    # --- tiny one-time weight preprocessing (pure linear re-association) ------
    # (a) lane-tile W2/b2 so the 2nd MLP matmul emits the (N, K*H) replicated h.
    w2_rep = jnp.tile(params["w2"], (1, 1, K))            # (R, H, K*H)
    b2_rep = jnp.tile(params["b2"], (1, 1, K))            # (R, 1, K*H)
    # (b) fold PolyConv thetas into linear3:
    #     sum_k (sum_j theta[k][j] p_j) @ W3_k == sum_j p_j @ (sum_k theta[k][j] W3_k)
    T = jnp.asarray(thetas, jnp.float32)                  # (K, K), [k, j]
    w3_blocks = params["w3"].reshape(K, H, H)             # block k multiplies conv_k
    w3_eff = jnp.einsum("kj,kho->jho", T, w3_blocks).reshape(KH, H)

    # --- generation-aware VMEM budget (64 MiB/TC on v7x, 128 MiB on v5e/v6e) --
    try:
        vmem_limit = int(pltpu.get_tpu_info().vmem_capacity_bytes * 3 // 4)
    except Exception:
        vmem_limit = 32 * 1024 * 1024

    kernel = _make_bwgnn_kernel(K, H, slope)

    out_rel = pl.pallas_call(
        kernel,
        out_shape=jax.ShapeDtypeStruct((R, N, H), jnp.float32),
        grid=(R,),
        in_specs=[
            pl.BlockSpec((1, N, IN), lambda r: (r, 0, 0)),   # feat  (per relation)
            pl.BlockSpec((1, IN, H), lambda r: (r, 0, 0)),   # W1
            pl.BlockSpec((1, 1, H), lambda r: (r, 0, 0)),    # b1
            pl.BlockSpec((1, H, KH), lambda r: (r, 0, 0)),   # W2 (lane-tiled K times)
            pl.BlockSpec((1, 1, KH), lambda r: (r, 0, 0)),   # b2 (lane-tiled K times)
            pl.BlockSpec((1, N, N), lambda r: (r, 0, 0)),    # adjacency (int8, 0/1)
            pl.BlockSpec((1, N, 1), lambda r: (r, 0, 0)),    # in_deg^{-1/2}
            pl.BlockSpec((KH, H), lambda r: (0, 0)),         # theta-folded W3 (shared)
            pl.BlockSpec((1, H), lambda r: (0, 0)),          # shared b3
        ],
        out_specs=pl.BlockSpec((1, N, H), lambda r: (r, 0, 0)),   # per-relation output
        compiler_params=pltpu.CompilerParams(
            # independent per-relation blocks -> megacore-shardable on v7x
            dimension_semantics=("parallel",),
            vmem_limit_bytes=vmem_limit,
        ),
    )(feats, params["w1"], params["b1"], w2_rep, b2_rep, adjs_i8, dinvs,
      w3_eff, params["b3"])

    # fused torch.stack(outputs).sum(0) + final LeakyReLU (dropout = identity):
    # negligible XLA epilogue over (R, N, H).
    y = out_rel.sum(axis=0)
    return jnp.maximum(y, slope * y)


# -----------------------------------------------------------------------------
# Plain-JAX glue: dense graph construction, parameter init, reference model
# -----------------------------------------------------------------------------
def build_dense_graph(src, dst, n_nodes):
    # A[dst, src] = 1 ; in-degree normalization with clamp(min=1)
    A = jnp.zeros((n_nodes, n_nodes), jnp.float32).at[dst, src].add(1.0)
    deg = jnp.sum(A, axis=1, keepdims=True)
    dinv = jnp.power(jnp.maximum(deg, 1.0), -0.5)
    return A, dinv


def _init_linear(key, fan_in, fan_out):
    kw, kb = jax.random.split(key)
    bound = 1.0 / math.sqrt(fan_in)
    w = jax.random.uniform(kw, (fan_in, fan_out), jnp.float32, -bound, bound)
    b = jax.random.uniform(kb, (1, fan_out), jnp.float32, -bound, bound)
    return w, b


def init_params(key, n_rel, in_feats, h_feats, k_convs):
    w1, b1, w2, b2 = [], [], [], []
    for r in range(n_rel):
        kr = jax.random.fold_in(key, r)
        k1, k2 = jax.random.split(kr)
        w, b = _init_linear(k1, in_feats, h_feats); w1.append(w); b1.append(b)
        w, b = _init_linear(k2, h_feats, h_feats);  w2.append(w); b2.append(b)
    k3 = jax.random.fold_in(key, 10_000)
    w3, b3 = _init_linear(k3, k_convs * h_feats, h_feats)   # linear3 is shared
    return {
        "w1": jnp.stack(w1), "b1": jnp.stack(b1),
        "w2": jnp.stack(w2), "b2": jnp.stack(b2),
        "w3": w3, "b3": b3,
    }


def reference_forward(feats, adjs, dinvs, params, thetas, slope=0.01):
    """Pure-JAX reference of BWGNN_Hetero.forward (eval mode, HIGHEST precision)."""
    hp = jax.lax.Precision.HIGHEST
    R = feats.shape[0]
    K = len(thetas)
    outs = []
    for r in range(R):
        h = jnp.dot(feats[r], params["w1"][r], precision=hp) + params["b1"][r]
        h = jnp.where(h > 0, h, slope * h)
        h = jnp.dot(h, params["w2"][r], precision=hp) + params["b2"][r]
        h = jnp.where(h > 0, h, slope * h)
        a = adjs[r].astype(jnp.float32)
        dinv = dinvs[r]
        powers = [h]
        p = h
        for _ in range(K - 1):
            p = p - dinv * jnp.dot(a, p * dinv, precision=hp)
            powers.append(p)
        blocks = [sum(thetas[k][j] * powers[j] for j in range(K)) for k in range(K)]
        h_final = jnp.concatenate(blocks, axis=-1)
        outs.append(jnp.dot(h_final, params["w3"], precision=hp) + params["b3"])
    y = sum(outs)
    return jnp.where(y > 0, y, slope * y)


# -----------------------------------------------------------------------------
# Driver
# -----------------------------------------------------------------------------
if __name__ == "__main__":
    N_NODES = 128
    IN_FEATS = 64
    H_FEATS = 32
    D_ORDER = 3                      # d -> K = d+1 = 4 PolyConvs, K*H = 128 lanes
    N_RAW_EDGES = 512
    ETYPES = ["net_upu", "net_usu"]

    thetas = calculate_theta2(D_ORDER)
    K = len(thetas)

    root = jax.random.PRNGKey(0)
    k_feat, k_param, k_graph = jax.random.split(root, 3)

    feats, adjs, dinvs = [], [], []
    for i, etype in enumerate(ETYPES):
        kf = jax.random.fold_in(k_feat, i)
        feats.append(jax.random.normal(kf, (N_NODES, IN_FEATS), jnp.float32))

        kg = jax.random.fold_in(k_graph, i)
        ks, kd = jax.random.split(kg)
        src = np.asarray(jax.random.randint(ks, (N_RAW_EDGES,), 0, N_NODES))
        dst = np.asarray(jax.random.randint(kd, (N_RAW_EDGES,), 0, N_NODES))
        flat = np.unique(src * N_NODES + dst)        # simple graph (dedup edges)
        src_u = jnp.asarray(flat // N_NODES, jnp.int32)
        dst_u = jnp.asarray(flat % N_NODES, jnp.int32)
        A, dinv = build_dense_graph(src_u, dst_u, N_NODES)
        adjs.append(A)
        dinvs.append(dinv)

    feats = jnp.stack(feats)                          # (R, N, IN)  f32
    adjs_f32 = jnp.stack(adjs)                        # (R, N, N)   f32 reference copy
    adjs_i8 = adjs_f32.astype(jnp.int8)               # 1-byte streamed operand (exact 0/1)
    dinvs = jnp.stack(dinvs)                          # (R, N, 1)   f32

    params = init_params(k_param, len(ETYPES), IN_FEATS, H_FEATS, K)

    out = bwgnn_hetero_forward(feats, adjs_i8, dinvs, params, thetas)
    out = jax.block_until_ready(out)

    assert out.shape == (N_NODES, H_FEATS), out.shape
    assert bool(jnp.all(jnp.isfinite(out)))

    ref = reference_forward(feats, adjs_f32, dinvs, params, thetas)
    ref = jax.block_until_ready(ref)
    # Tolerance accounts for the bf16-in / f32-accumulate message-passing fast
    # path (K-1 recursion steps) vs. the HIGHEST-precision f32 reference.
    np.testing.assert_allclose(np.asarray(out), np.asarray(ref), rtol=2e-2, atol=2e-2)

    print("KERNEL_OK")
</pallas_src>

<mosaic_0001>
module attributes {stable_mosaic.version = 11 : i64} {
  func.func @kernel(%arg0: i32, %arg1: memref<1x128x64xf32, #tpu.memory_space<vmem>>, %arg2: memref<1x64x32xf32, #tpu.memory_space<vmem>>, %arg3: memref<1x1x32xf32, #tpu.memory_space<vmem>>, %arg4: memref<1x32x128xf32, #tpu.memory_space<vmem>>, %arg5: memref<1x1x128xf32, #tpu.memory_space<vmem>>, %arg6: memref<1x128x128xi8, #tpu.memory_space<vmem>>, %arg7: memref<1x128x1xf32, #tpu.memory_space<vmem>>, %arg8: memref<128x32xf32, #tpu.memory_space<vmem>>, %arg9: memref<1x32xf32, #tpu.memory_space<vmem>>, %arg10: memref<1x128x32xf32, #tpu.memory_space<vmem>>) attributes {dimension_semantics = [#tpu.dimension_semantics<parallel>], iteration_bounds = array<i64: 2>, scalar_prefetch = 0 : i64, scratch_operands = 0 : i64, tpu.core_type = #tpu.core_type<tc>, window_params = [{transform_indices = @transform_0, window_bounds = array<i64: 1, 128, 64>}, {transform_indices = @transform_1, window_bounds = array<i64: 1, 64, 32>}, {transform_indices = @transform_2, window_bounds = array<i64: 1, 1, 32>}, {transform_indices = @transform_3, window_bounds = array<i64: 1, 32, 128>}, {transform_indices = @transform_4, window_bounds = array<i64: 1, 1, 128>}, {transform_indices = @transform_5, window_bounds = array<i64: 1, 128, 128>}, {transform_indices = @transform_6, window_bounds = array<i64: 1, 128, 1>}, {pipeline_mode = #tpu.pipeline_mode<synchronous>, transform_indices = @transform_7, window_bounds = array<i64: 128, 32>}, {pipeline_mode = #tpu.pipeline_mode<synchronous>, transform_indices = @transform_8, window_bounds = array<i64: 1, 32>}, {transform_indices = @transform_9, window_bounds = array<i64: 1, 128, 32>}]} {
    %c0 = arith.constant 0 : index
    %c0_0 = arith.constant 0 : index
    %c0_1 = arith.constant 0 : index
    %0 = vector.load %arg1[%c0, %c0_0, %c0_1] : memref<1x128x64xf32, #tpu.memory_space<vmem>>, vector<1x128x64xf32>
    %1 = vector.shape_cast %0 : vector<1x128x64xf32> to vector<128x64xf32>
    %c0_2 = arith.constant 0 : index
    %c0_3 = arith.constant 0 : index
    %c0_4 = arith.constant 0 : index
    %2 = vector.load %arg2[%c0_2, %c0_3, %c0_4] : memref<1x64x32xf32, #tpu.memory_space<vmem>>, vector<1x64x32xf32>
    %3 = vector.shape_cast %2 : vector<1x64x32xf32> to vector<64x32xf32>
    %cst = arith.constant dense<0.000000e+00> : vector<128x32xf32>
    %4 = tpu.matmul %1, %3, %cst {dimension_numbers = #tpu.dot_dimension_numbers<[1], [0], [0], [1], [0, 0, 1, 1], [], []>} : vector<128x64xf32>, vector<64x32xf32>, vector<128x32xf32> -> vector<128x32xf32>
    %c0_5 = arith.constant 0 : index
    %c0_6 = arith.constant 0 : index
    %c0_7 = arith.constant 0 : index
    %5 = vector.load %arg3[%c0_5, %c0_6, %c0_7] : memref<1x1x32xf32, #tpu.memory_space<vmem>>, vector<1x1x32xf32>
    %6 = vector.shape_cast %5 : vector<1x1x32xf32> to vector<1x32xf32>
    %7 = vector.broadcast %6 : vector<1x32xf32> to vector<128x32xf32>
    %8 = arith.addf %4, %7 : vector<128x32xf32>
    %cst_8 = arith.constant 0.00999999977 : f32
    %9 = vector.broadcast %cst_8 : f32 to vector<128x32xf32>
    %10 = arith.mulf %9, %8 : vector<128x32xf32>
    %11 = arith.maximumf %8, %10 : vector<128x32xf32>
    %c0_9 = arith.constant 0 : index
    %c0_10 = arith.constant 0 : index
    %c0_11 = arith.constant 0 : index
    %12 = vector.load %arg4[%c0_9, %c0_10, %c0_11] : memref<1x32x128xf32, #tpu.memory_space<vmem>>, vector<1x32x128xf32>
    %13 = vector.shape_cast %12 : vector<1x32x128xf32> to vector<32x128xf32>
    %cst_12 = arith.constant dense<0.000000e+00> : vector<128x128xf32>
    %14 = tpu.matmul %11, %13, %cst_12 {dimension_numbers = #tpu.dot_dimension_numbers<[1], [0], [0], [1], [0, 0, 1, 1], [], []>} : vector<128x32xf32>, vector<32x128xf32>, vector<128x128xf32> -> vector<128x128xf32>
    %c0_13 = arith.constant 0 : index
    %c0_14 = arith.constant 0 : index
    %c0_15 = arith.constant 0 : index
    %15 = vector.load %arg5[%c0_13, %c0_14, %c0_15] : memref<1x1x128xf32, #tpu.memory_space<vmem>>, vector<1x1x128xf32>
    %16 = vector.shape_cast %15 : vector<1x1x128xf32> to vector<1x128xf32>
    %17 = vector.broadcast %16 : vector<1x128xf32> to vector<128x128xf32>
    %18 = arith.addf %14, %17 : vector<128x128xf32>
    %cst_16 = arith.constant 0.00999999977 : f32
    %19 = vector.broadcast %cst_16 : f32 to vector<128x128xf32>
    %20 = arith.mulf %19, %18 : vector<128x128xf32>
    %21 = arith.maximumf %18, %20 : vector<128x128xf32>
    %c0_17 = arith.constant 0 : index
    %c0_18 = arith.constant 0 : index
    %c0_19 = arith.constant 0 : index
    %22 = vector.load %arg6[%c0_17, %c0_18, %c0_19] : memref<1x128x128xi8, #tpu.memory_space<vmem>>, vector<1x128x128xi8>
    %23 = vector.shape_cast %22 : vector<1x128x128xi8> to vector<128x128xi8>
    %24 = arith.sitofp %23 : vector<128x128xi8> to vector<128x128xbf16>
    %c0_20 = arith.constant 0 : index
    %c0_21 = arith.constant 0 : index
    %c0_22 = arith.constant 0 : index
    %25 = vector.load %arg7[%c0_20, %c0_21, %c0_22] : memref<1x128x1xf32, #tpu.memory_space<vmem>>, vector<1x128x1xf32>
    %26 = vector.shape_cast %25 : vector<1x128x1xf32> to vector<128x1xf32>
    %27 = vector.shape_cast %26 : vector<128x1xf32> to vector<128x1xf32>
    %28 = vector.broadcast %27 : vector<128x1xf32> to vector<128x128xf32>
    %29 = tpu.iota {dimensions = array<i32: 1>} : vector<128x128xi32>
    %30 = arith.mulf %21, %28 : vector<128x128xf32>
    %31 = arith.truncf %30 : vector<128x128xf32> to vector<128x128xbf16>
    %cst_23 = arith.constant dense<0.000000e+00> : vector<128x128xf32>
    %32 = tpu.matmul %24, %31, %cst_23 {dimension_numbers = #tpu.dot_dimension_numbers<[1], [0], [0], [1], [0, 0, 1, 1], [], []>} : vector<128x128xbf16>, vector<128x128xbf16>, vector<128x128xf32> -> vector<128x128xf32>
    %c32_i32 = arith.constant 32 : i32
    %33 = vector.broadcast %c32_i32 : i32 to vector<128x128xi32>
    %34 = arith.cmpi sge, %29, %33 : vector<128x128xi32>
    %35 = arith.mulf %32, %28 : vector<128x128xf32>
    %36 = arith.subf %21, %35 : vector<128x128xf32>
    %37 = arith.select %34, %36, %21 : vector<128x128xi1>, vector<128x128xf32>
    %38 = arith.mulf %37, %28 : vector<128x128xf32>
    %39 = arith.truncf %38 : vector<128x128xf32> to vector<128x128xbf16>
    %cst_24 = arith.constant dense<0.000000e+00> : vector<128x128xf32>
    %40 = tpu.matmul %24, %39, %cst_24 {dimension_numbers = #tpu.dot_dimension_numbers<[1], [0], [0], [1], [0, 0, 1, 1], [], []>} : vector<128x128xbf16>, vector<128x128xbf16>, vector<128x128xf32> -> vector<128x128xf32>
    %c64_i32 = arith.constant 64 : i32
    %41 = vector.broadcast %c64_i32 : i32 to vector<128x128xi32>
    %42 = arith.cmpi sge, %29, %41 : vector<128x128xi32>
    %43 = arith.mulf %40, %28 : vector<128x128xf32>
    %44 = arith.subf %37, %43 : vector<128x128xf32>
    %45 = arith.select %42, %44, %37 : vector<128x128xi1>, vector<128x128xf32>
    %46 = arith.mulf %45, %28 : vector<128x128xf32>
    %47 = arith.truncf %46 : vector<128x128xf32> to vector<128x128xbf16>
    %cst_25 = arith.constant dense<0.000000e+00> : vector<128x128xf32>
    %48 = tpu.matmul %24, %47, %cst_25 {dimension_numbers = #tpu.dot_dimension_numbers<[1], [0], [0], [1], [0, 0, 1, 1], [], []>} : vector<128x128xbf16>, vector<128x128xbf16>, vector<128x128xf32> -> vector<128x128xf32>
    %c96_i32 = arith.constant 96 : i32
    %49 = vector.broadcast %c96_i32 : i32 to vector<128x128xi32>
    %50 = arith.cmpi sge, %29, %49 : vector<128x128xi32>
    %51 = arith.mulf %48, %28 : vector<128x128xf32>
    %52 = arith.subf %45, %51 : vector<128x128xf32>
    %53 = arith.select %50, %52, %45 : vector<128x128xi1>, vector<128x128xf32>
    %c0_26 = arith.constant 0 : index
    %c0_27 = arith.constant 0 : index
    %54 = vector.load %arg8[%c0_26, %c0_27] : memref<128x32xf32, #tpu.memory_space<vmem>>, vector<128x32xf32>
    %cst_28 = arith.constant dense<0.000000e+00> : vector<128x32xf32>
    %55 = tpu.matmul %53, %54, %cst_28 {dimension_numbers = #tpu.dot_dimension_numbers<[1], [0], [0], [1], [0, 0, 1, 1], [], []>} : vector<128x128xf32>, vector<128x32xf32>, vector<128x32xf32> -> vector<128x32xf32>
    %c0_29 = arith.constant 0 : index
    %c0_30 = arith.constant 0 : index
    %56 = vector.load %arg9[%c0_29, %c0_30] : memref<1x32xf32, #tpu.memory_space<vmem>>, vector<1x32xf32>
    %57 = vector.broadcast %56 : vector<1x32xf32> to vector<128x32xf32>
    %58 = arith.addf %55, %57 : vector<128x32xf32>
    %c0_31 = arith.constant 0 : index
    %c0_32 = arith.constant 0 : index
    %c0_33 = arith.constant 0 : index
    %59 = vector.load %arg10[%c0_31, %c0_32, %c0_33] : memref<1x128x32xf32, #tpu.memory_space<vmem>>, vector<1x128x32xf32>
    %60 = vector.shape_cast %59 : vector<1x128x32xf32> to vector<128x32xf32>
    %61 = vector.shape_cast %58 : vector<128x32xf32> to vector<1x128x32xf32>
    tpu.vector_store %arg10[%c0_31, %c0_32, %c0_33], %61 {strides = array<i32>} : memref<1x128x32xf32, #tpu.memory_space<vmem>>, vector<1x128x32xf32>,
    return
  }
  func.func @transform_0(%arg0: i32) -> (i32, i32, i32) {
    %c0_i32 = arith.constant 0 : i32
    %c0_i32_0 = arith.constant 0 : i32
    %c0_i32_1 = arith.constant 0 : i32
    return %arg0, %c0_i32, %c0_i32_0 : i32, i32, i32
  }
  func.func @transform_1(%arg0: i32) -> (i32, i32, i32) {
    %c0_i32 = arith.constant 0 : i32
    %c0_i32_0 = arith.constant 0 : i32
    %c0_i32_1 = arith.constant 0 : i32
    return %arg0, %c0_i32, %c0_i32_0 : i32, i32, i32
  }
  func.func @transform_2(%arg0: i32) -> (i32, i32, i32) {
    %c0_i32 = arith.constant 0 : i32
    %c0_i32_0 = arith.constant 0 : i32
    %c0_i32_1 = arith.constant 0 : i32
    return %arg0, %c0_i32, %c0_i32_0 : i32, i32, i32
  }
  func.func @transform_3(%arg0: i32) -> (i32, i32, i32) {
    %c0_i32 = arith.constant 0 : i32
    %c0_i32_0 = arith.constant 0 : i32
    %c0_i32_1 = arith.constant 0 : i32
    return %arg0, %c0_i32, %c0_i32_0 : i32, i32, i32
  }
  func.func @transform_4(%arg0: i32) -> (i32, i32, i32) {
    %c0_i32 = arith.constant 0 : i32
    %c0_i32_0 = arith.constant 0 : i32
    %c0_i32_1 = arith.constant 0 : i32
    return %arg0, %c0_i32, %c0_i32_0 : i32, i32, i32
  }
  func.func @transform_5(%arg0: i32) -> (i32, i32, i32) {
    %c0_i32 = arith.constant 0 : i32
    %c0_i32_0 = arith.constant 0 : i32
    %c0_i32_1 = arith.constant 0 : i32
    return %arg0, %c0_i32, %c0_i32_0 : i32, i32, i32
  }
  func.func @transform_6(%arg0: i32) -> (i32, i32, i32) {
    %c0_i32 = arith.constant 0 : i32
    %c0_i32_0 = arith.constant 0 : i32
    %c0_i32_1 = arith.constant 0 : i32
    return %arg0, %c0_i32, %c0_i32_0 : i32, i32, i32
  }
  func.func @transform_7(%arg0: i32) -> (i32, i32) {
    %c0_i32 = arith.constant 0 : i32
    %c0_i32_0 = arith.constant 0 : i32
    %c0_i32_1 = arith.constant 0 : i32
    return %c0_i32, %c0_i32_0 : i32, i32
  }
  func.func @transform_8(%arg0: i32) -> (i32, i32) {
    %c0_i32 = arith.constant 0 : i32
    %c0_i32_0 = arith.constant 0 : i32
    %c0_i32_1 = arith.constant 0 : i32
    return %c0_i32, %c0_i32_0 : i32, i32
  }
  func.func @transform_9(%arg0: i32) -> (i32, i32, i32) {
    %c0_i32 = arith.constant 0 : i32
    %c0_i32_0 = arith.constant 0 : i32
    %c0_i32_1 = arith.constant 0 : i32
    return %arg0, %c0_i32, %c0_i32_0 : i32, i32, i32
  }
}

</mosaic_0001>

<bundles_post_ra>
// kernel: tpu_custom_call.1
= control target key start
LH: loop header
LB: loop body
LE: loop exit
PB: predicated region body
PF: predicated region fallthrough
CT: control target
= control target key end

     0   :  { %s1650_s30 = smov 0   ;;  %s2436_s0 = inlined_call_operand.vmem [shape: f32[2,128,64], index: 0, kind: input, shape index: {}]   ;;  %s2437_s1 = inlined_call_operand.vmem [shape: f32[2,64,32], index: 1, kind: input, shape index: {}]   ;;  %s2438_s2 = inlined_call_operand.vmem [shape: f32[2,1,32], index: 2, kind: input, shape index: {}]   ;;  %s2439_s3 = inlined_call_operand.vmem [shape: f32[2,32,128], index: 3, kind: input, shape index: {}]   ;;  %s2440_s4 = inlined_call_operand.vmem [shape: f32[2,1,128], index: 4, kind: input, shape index: {}]   ;;  %s2441_s5 = inlined_call_operand.vmem [shape: s8[2,128,128], index: 5, kind: input, shape index: {}]   ;;  %s2442_s6 = inlined_call_operand.vmem [shape: f32[2,128,1], index: 6, kind: input, shape index: {}]   ;;  %s2443_s7 = inlined_call_operand.vmem [shape: f32[128,32], index: 7, kind: input, shape index: {}]   ;;  %s2444_s8 = inlined_call_operand.vmem [shape: f32[1,32], index: 8, kind: input, shape index: {}]   ;;  %s2445_s9 = inlined_call_operand.vmem [shape: f32[2,128,32], index: 9, kind: output, shape index: {}]  }
   0x1 LB: > { %s1499_s10 = sadd.s32 4294967295, %s1597_s30   ;;  %p1503_p0 = scmp.ge.s32.totalorder %s1597_s30, 1  ;;  %s1597_s30 = sphi %s1650_s30, %s19_s30  }
   0x2   : > { %p343_p1 = scmp.lt.s32.totalorder %s1597_s30, 3 }
   0x4   : > { %p344_p2 = pnand %p1503_p0, %p343_p1 }
   0x6   : > { %347 = sbr.rel (%p344_p2) target bundleno = 1363 (0x553), region = 56 }
   0xb   : > { %p405_p3 = scmp.lt.s32.totalorder %s1499_s10, 1  ;;  %vm469_vm0 = vcmask 523264   ;;  %v1599_v18 = vmov 0   ;;  %vm623_vm1 = vcmask 261120  }
   0xc   : > { %1585 = vset.pattern.permute.xlu0 %v1599_v18  ;;  %1586 = vset.pattern.permute.xlu1 %v1599_v18 }
   0xd   : > { %s2457_s10 = smov (!%p405_p3, %s1499_s10), 1  ;;  %1587 = vset.pattern.permute.xlu2 %v1599_v18 }
   0xe   : > { %s1551_s11 = sshll.u32 %s2457_s10, 6  ;;  %s417_s17 = scalar_lea.vmem %s2438_s2, %s2457_s10 }
   0xf   : > { %s414_s14 = scalar_lea.vmem %s2437_s1, %s1551_s11  ;;  %s425_s20 = scalar_lea.vmem %s2440_s4, %s2457_s10  ;;  %v1738_v37 = vld [vmem:[%s417_s17] ss:$0 sm:$0xff] }
  0x10   : > { %v464_v0 = vld [vmem:[%s414_s14 + $0x38] sm:$0xff]  ;;  %v463_v1 = vld [vmem:[%s414_s14 + $0x30] sm:$0xff]  ;;  %v462_v2 = vld [vmem:[%s414_s14 + $0x28] sm:$0xff]  ;;  %s1673_s21 = sshll.u32 %s2457_s10, 7  ;;  %s1552_s28 = sshll.u32 %s2457_s10, 5 }
  0x11   : > { %526 = vmatpush.msra.mxu0 %v464_v0  ;;  %1556 = vmatpush.msra.mxu2 %v464_v0  ;;  %v461_v3 = vld [vmem:[%s414_s14 + $0x20] sm:$0xff]  ;;  %v460_v4 = vld [vmem:[%s414_s14 + $0x18] sm:$0xff]  ;;  %v459_v5 = vld [vmem:[%s414_s14 + $0x10] sm:$0xff]  ;;  %s1679_s24 = scalar_lea.vmem %s2436_s0, %s1673_s21  ;;  %s1699_s27 = scalar_lea.vmem %s2442_s6, %s1673_s21 }
  0x12   : > { %1557 = vmatpush.msra.mxu3 %v464_v0  ;;  %v458_v6 = vld [vmem:[%s414_s14 + $0x8] sm:$0xff]  ;;  %v457_v7 = vld [vmem:[%s414_s14] sm:$0xff]  ;;  %v443_v12 = vld [vmem:[%s1679_s24 + $0x10] sm:$0xff]  ;;  %s422_s12 = scalar_lea.vmem %s2439_s3, %s1552_s28  ;;  %s1892_s19 = scalar_lea.vmem %s2441_s5, %s1552_s28 }
  0x13   : > { %527 = vmatpush.msra.mxu0 %v463_v1  ;;  %1558 = vmatpush.msra.mxu2 %v463_v1  ;;  %v441_v8 = vld [vmem:[%s1679_s24] sm:$0xff]  ;;  %v442_v10 = vld [vmem:[%s1679_s24 + $0x8] sm:$0xff]  ;;  %v451_v13 = vld [vmem:[%s1679_s24 + $0x50] sm:$0xff]  ;;  %s2399_s18 = scalar_lea.vmem %s2445_s9, %s1673_s21 }
  0x14   : > { %1559 = vmatpush.msra.mxu3 %v463_v1  ;;  %v449_v9 = vld [vmem:[%s1679_s24 + $0x40] sm:$0xff]  ;;  %v450_v11 = vld [vmem:[%s1679_s24 + $0x48] sm:$0xff]  ;;  %v456_v14 = vld [vmem:[%s1679_s24 + $0x78] sm:$0xff] }
  0x15   : > { %528 = vmatpush.msra.mxu0 %v462_v2  ;;  %1560 = vmatpush.msra.mxu2 %v462_v2  ;;  %v444_v15 = vld [vmem:[%s1679_s24 + $0x18] sm:$0xff]  ;;  %v827_v17 = vld [vmem:[%s1699_s27 + $0x70] sm:$0xff]  ;;  %v445_v19 = vld [vmem:[%s1679_s24 + $0x20] sm:$0xff] }
  0x16   : > { %1561 = vmatpush.msra.mxu3 %v462_v2  ;;  %v452_v16 = vld [vmem:[%s1679_s24 + $0x58] sm:$0xff]  ;;  %901 = vperm.xlu0 %1585, %v827_v17   ;;  %v453_v20 = vld [vmem:[%s1679_s24 + $0x60] sm:$0xff]  ;;  %v446_v21 = vld [vmem:[%s1679_s24 + $0x28] sm:$0xff] }
  0x17   : > { %529 = vmatpush.msra.mxu0 %v461_v3  ;;  %1562 = vmatpush.msra.mxu2 %v461_v3  ;;  %v454_v22 = vld [vmem:[%s1679_s24 + $0x68] sm:$0xff]  ;;  %v447_v23 = vld [vmem:[%s1679_s24 + $0x30] sm:$0xff]  ;;  %v448_v25 = vld [vmem:[%s1679_s24 + $0x38] sm:$0xff] }
  0x18   : > { %1563 = vmatpush.msra.mxu3 %v461_v3  ;;  %v455_v24 = vld [vmem:[%s1679_s24 + $0x70] sm:$0xff]  ;;  %v618_v26 = vld [vmem:[%s422_s12 + $0x18] sm:$0xff]  ;;  %v616_v28 = vld [vmem:[%s422_s12 + $0x8] sm:$0xff] }
  0x19   : > { %530 = vmatpush.msra.mxu0 %v460_v4  ;;  %1564 = vmatpush.msra.mxu2 %v460_v4  ;;  %v617_v27 = vld [vmem:[%s422_s12 + $0x10] sm:$0xff]  ;;  %v828_v29 = vld [vmem:[%s1699_s27 + $0x78] sm:$0xff]  ;;  %v615_v30 = vld [vmem:[%s422_s12] sm:$0xff] }
  0x1a   : > { %1565 = vmatpush.msra.mxu3 %v460_v4  ;;  %684 = vmatpush.msra.mxu1 %v618_v26  ;;  %v821_v31 = vld [vmem:[%s1699_s27 + $0x40] sm:$0xff]  ;;  %v820_v33 = vld [vmem:[%s1699_s27 + $0x38] sm:$0xff]  ;;  %v826_v34 = vld [vmem:[%s1699_s27 + $0x68] sm:$0xff] }
  0x1b   : > { %531 = vmatpush.msra.mxu0 %v459_v5  ;;  %1566 = vmatpush.msra.mxu2 %v459_v5  ;;  %v825_v32 = vld [vmem:[%s1699_s27 + $0x60] sm:$0xff]  ;;  %v823_v35 = vld [vmem:[%s1699_s27 + $0x50] sm:$0xff]  ;;  %v824_v41 = vld [vmem:[%s1699_s27 + $0x58] sm:$0xff] }
  0x1c   : > { %1567 = vmatpush.msra.mxu3 %v459_v5  ;;  %685 = vmatpush.msra.mxu1 %v617_v27  ;;  %v815_v36 = vld [vmem:[%s1699_s27 + $0x10] sm:$0xff]  ;;  %v822_v42 = vld [vmem:[%s1699_s27 + $0x48] sm:$0xff]  ;;  %v817_v50 = vld [vmem:[%s1699_s27 + $0x20] sm:$0xff] }
  0x1d   : > { %532 = vmatpush.msra.mxu0 %v458_v6  ;;  %1568 = vmatpush.msra.mxu2 %v458_v6  ;;  %v814_v43 = vld [vmem:[%s1699_s27 + $0x8] sm:$0xff]  ;;  %v819_v49 = vld [vmem:[%s1699_s27 + $0x30] sm:$0xff]  ;;  %v816_v60 = vld [vmem:[%s1699_s27 + $0x18] sm:$0xff] }
  0x1e   : > { %1569 = vmatpush.msra.mxu3 %v458_v6  ;;  %686 = vmatpush.msra.mxu1 %v616_v28  ;;  %v818_v59 = vld [vmem:[%s1699_s27 + $0x28] sm:$0xff]  ;;  %v813_v5 = vld [vmem:[%s1699_s27] sm:$0xff] }
  0x1f   : > { %533 = vmatpush.msra.mxu0 %v457_v7  ;;  %1570 = vmatpush.msra.mxu2 %v457_v7 }
  0x20   : > { %1516 = vmatmul.msk.f32.vlgmr.msra.gmra.mxu0 %vm469_vm0, %v441_v8  ;;  %1524 = vmatmul.msk.f32.vlgmr.msra.gmra.mxu2 %vm469_vm0, %v449_v9 }
  0x21   : > { %1571 = vmatpush.msra.mxu3 %v457_v7  ;;  %906 = vperm.xlu0 %1585, %v828_v29  }
  0x22   : > { %1531 = vmatmul.msk.f32.vlgmr.msra.gmra.mxu3 %vm469_vm0, %v456_v14  ;;  %687 = vmatpush.msra.mxu1 %v615_v30 }
  0x23   : > { %1572 = vmatpush.msrb.mxu3 %v618_v26  ;;  %891 = vperm.xlu1 %1586, %v825_v32  }
  0x24   : > { %881 = vperm.xlu2 %1587, %v823_v35  }
  0x25   : > { %1573 = vmatpush.msrb.mxu3 %v617_v27 }
  0x27   : > { %1574 = vmatpush.msrb.mxu3 %v616_v28 }
  0x28   : > { %1517 = vmatmul.msk.f32.gmra.mxu0 %vm469_vm0, %v442_v10  ;;  %1525 = vmatmul.msk.f32.gmra.mxu2 %vm469_vm0, %v450_v11 }
  0x29   : > { %1575 = vmatpush.msrb.mxu3 %v615_v30  ;;  %871 = vperm.xlu0 %1585, %v821_v31  }
  0x2b   : > { %896 = vperm.xlu1 %1586, %v826_v34  }
  0x2c   : > { %886 = vperm.xlu2 %1587, %v824_v41  }
  0x30   : > { %1518 = vmatmul.msk.f32.gmra.mxu0 %vm469_vm0, %v443_v12  ;;  %1526 = vmatmul.msk.f32.gmra.mxu2 %vm469_vm0, %v451_v13 }
  0x31   : > { %866 = vperm.xlu0 %1585, %v820_v33  }
  0x33   : > { %876 = vperm.xlu1 %1586, %v822_v42  }
  0x34   : > { %861 = vperm.xlu2 %1587, %v819_v49  }
  0x38   : > { %1519 = vmatmul.msk.f32.gmra.mxu0 %vm469_vm0, %v444_v15  ;;  %1527 = vmatmul.msk.f32.gmra.mxu2 %vm469_vm0, %v452_v16 }
  0x39   : > { %841 = vperm.xlu0 %1585, %v815_v36  }
  0x3b   : > { %851 = vperm.xlu1 %1586, %v817_v50  }
  0x3c   : > { %856 = vperm.xlu2 %1587, %v818_v59  }
  0x40   : > { %1520 = vmatmul.msk.f32.gmra.mxu0 %vm469_vm0, %v445_v19  ;;  %1528 = vmatmul.msk.f32.gmra.mxu2 %vm469_vm0, %v453_v20 }
  0x41   : > { %836 = vperm.xlu0 %1585, %v814_v43  }
  0x43   : > { %846 = vperm.xlu1 %1586, %v816_v60  }
  0x44   : > { %831 = vperm.xlu2 %1587, %v813_v5  }
  0x48   : > { %1521 = vmatmul.msk.f32.gmra.mxu0 %vm469_vm0, %v446_v21  ;;  %1529 = vmatmul.msk.f32.gmra.mxu2 %vm469_vm0, %v454_v22 }
  0x50   : > { %1522 = vmatmul.msk.f32.gmra.mxu0 %vm469_vm0, %v447_v23  ;;  %1530 = vmatmul.msk.f32.gmra.mxu2 %vm469_vm0, %v455_v24 }
  0x58   : > { %1523 = vmatmul.msk.f32.gmra.mxu0 %vm469_vm0, %v448_v25 }
  0x9d   : > { %v535_v38 = vpop.f32.mrf.mxu0 }
  0x9e   : > { %v536_v39 = vadd.f32 %v1738_v37, %v535_v38 }
  0xa0   : > { %v583_v40 = vmul.f32 0.01, %v536_v39 }
  0xa2   : > { %v599_v44 = vmax.f32 %v536_v39, %v583_v40 }
  0xa3   : > { %v1744_v45 = vpop.f32.mrf.mxu2 }
  0xa4   : > { %1532 = vmatmul.msk.f32.vlgmr.msra.gmra.mxu1 %vm623_vm1, %v599_v44  ;;  %v560_v41 = vadd.f32 %v1738_v37, %v1744_v45 }
  0xa5   : > { %v538_v46 = vpop.f32.mrf.mxu0  ;;  %v580_v34 = vpop.f32.mrf.mxu3 }
  0xa6   : > { %v539_v47 = vadd.f32 %v1738_v37, %v538_v46  ;;  %v581_v40 = vadd.f32 %v1738_v37, %v580_v34  ;;  %v591_v44 = vmul.f32 0.01, %v560_v41 }
  0xa8   : > { %v584_v48 = vmul.f32 0.01, %v539_v47  ;;  %v598_v43 = vmul.f32 0.01, %v581_v40 }
  0xaa   : > { %v600_v51 = vmax.f32 %v539_v47, %v584_v48  ;;  %v614_v46 = vmax.f32 %v581_v40, %v598_v43  ;;  %v607_v47 = vmax.f32 %v560_v41, %v591_v44 }
  0xab   : > { %v562_v52 = vpop.f32.mrf.mxu2 }
  0xac   : > { %v563_v53 = vadd.f32 %v1738_v37, %v562_v52  ;;  %1533 = vmatmul.msk.f32.gmra.mxu1 %vm623_vm1, %v600_v51 }
  0xad   : > { %v541_v54 = vpop.f32.mrf.mxu0 }
  0xae   : > { %v592_v55 = vmul.f32 0.01, %v563_v53  ;;  %v542_v56 = vadd.f32 %v1738_v37, %v541_v54 }
  0xb0   : > { %v608_v57 = vmax.f32 %v563_v53, %v592_v55  ;;  %v585_v58 = vmul.f32 0.01, %v542_v56 }
  0xb2   : > { %v601_v61 = vmax.f32 %v542_v56, %v585_v58  ;;  %1541 = vmatmul.msk.f32.vlgmr.msrb.gmra.mxu3 %vm623_vm1, %v608_v57  ;;  %v1799_v58 = vpop.permute.xlu0 %901 }
  0xb3   : > { %v565_v62 = vpop.f32.mrf.mxu2 }
  0xb4   : > { %v566_v63 = vadd.f32 %v1738_v37, %v565_v62  ;;  %1534 = vmatmul.msk.f32.gmra.mxu1 %vm623_vm1, %v601_v61  ;;  %v1801_v61 = vpop.permute.xlu1 %891  ;;  %v1803_v62 = vpop.permute.xlu2 %881 }
  0xb5   : > { %v544_v0 = vpop.f32.mrf.mxu0 }
  0xb6   : > { %v593_v1 = vmul.f32 0.01, %v566_v63  ;;  %v545_v2 = vadd.f32 %v1738_v37, %v544_v0 }
  0xb8   : > { %v609_v3 = vmax.f32 %v566_v63, %v593_v1  ;;  %v586_v4 = vmul.f32 0.01, %v545_v2 }
  0xba   : > { %v602_v6 = vmax.f32 %v545_v2, %v586_v4  ;;  %1542 = vmatmul.msk.f32.gmra.mxu3 %vm623_vm1, %v609_v3  ;;  %v1805_v63 = vpop.permute.xlu0 %906 }
  0xbb   : > { %v568_v7 = vpop.f32.mrf.mxu2 }
  0xbc   : > { %v569_v8 = vadd.f32 %v1738_v37, %v568_v7  ;;  %1535 = vmatmul.msk.f32.gmra.mxu1 %vm623_vm1, %v602_v6  ;;  %v1808_v3 = vpop.permute.xlu1 %896  ;;  %v1811_v5 = vpop.permute.xlu2 %886 }
  0xbd   : > { %v547_v9 = vpop.f32.mrf.mxu0 }
  0xbe   : > { %v594_v10 = vmul.f32 0.01, %v569_v8  ;;  %v548_v11 = vadd.f32 %v1738_v37, %v547_v9 }
  0xc0   : > { %v610_v12 = vmax.f32 %v569_v8, %v594_v10  ;;  %v587_v13 = vmul.f32 0.01, %v548_v11 }
  0xc2   : > { %v603_v14 = vmax.f32 %v548_v11, %v587_v13  ;;  %1543 = vmatmul.msk.f32.gmra.mxu3 %vm623_vm1, %v610_v12  ;;  %v1814_v8 = vpop.permute.xlu0 %871 }
  0xc3   : > { %v571_v15 = vpop.f32.mrf.mxu2 }
  0xc4   : > { %v572_v16 = vadd.f32 %v1738_v37, %v571_v15  ;;  %1536 = vmatmul.msk.f32.gmra.mxu1 %vm623_vm1, %v603_v14 }
  0xc5   : > { %v550_v17 = vpop.f32.mrf.mxu0 }
  0xc6   : > { %v595_v18 = vmul.f32 0.01, %v572_v16  ;;  %v551_v19 = vadd.f32 %v1738_v37, %v550_v17 }
  0xc8   : > { %v611_v20 = vmax.f32 %v572_v16, %v595_v18  ;;  %v588_v21 = vmul.f32 0.01, %v551_v19 }
  0xca   : > { %v604_v22 = vmax.f32 %v551_v19, %v588_v21  ;;  %1544 = vmatmul.msk.f32.gmra.mxu3 %vm623_vm1, %v611_v20  ;;  %v1841_v34 = vpop.permute.xlu0 %866 }
  0xcb   : > { %v574_v23 = vpop.f32.mrf.mxu2 }
  0xcc   : > { %v575_v24 = vadd.f32 %v1738_v37, %v574_v23  ;;  %1537 = vmatmul.msk.f32.gmra.mxu1 %vm623_vm1, %v604_v22  ;;  %v1826_v22 = vpop.permute.xlu1 %876 }
  0xcd   : > { %v553_v25 = vpop.f32.mrf.mxu0 }
  0xce   : > { %v596_v26 = vmul.f32 0.01, %v575_v24  ;;  %v554_v27 = vadd.f32 %v1738_v37, %v553_v25 }
  0xd0   : > { %v612_v28 = vmax.f32 %v575_v24, %v596_v26  ;;  %v589_v29 = vmul.f32 0.01, %v554_v27 }
  0xd2   : > { %v605_v30 = vmax.f32 %v554_v27, %v589_v29  ;;  %1545 = vmatmul.msk.f32.gmra.mxu3 %vm623_vm1, %v612_v28 }
  0xd3   : > { %v577_v31 = vpop.f32.mrf.mxu2 }
  0xd4   : > { %v578_v32 = vadd.f32 %v1738_v37, %v577_v31  ;;  %1538 = vmatmul.msk.f32.gmra.mxu1 %vm623_vm1, %v605_v30 }
  0xd5   : > { %v556_v33 = vpop.f32.mrf.mxu0 }
  0xd6   : > { %v597_v35 = vmul.f32 0.01, %v578_v32  ;;  %v557_v36 = vadd.f32 %v1738_v37, %v556_v33  ;;  %v1790_v37 = vld [vmem:[%s425_s20] ss:$0 sm:$0xff] }
  0xd8   : > { %v613_v38 = vmax.f32 %v578_v32, %v597_v35  ;;  %v590_v39 = vmul.f32 0.01, %v557_v36  ;;  %v1843_v35 = vpop.permute.xlu2 %861 }
  0xda   : > { %v606_v42 = vmax.f32 %v557_v36, %v590_v39  ;;  %1546 = vmatmul.msk.f32.gmra.mxu3 %vm623_vm1, %v613_v38 }
  0xdc   : > { %1539 = vmatmul.msk.f32.gmra.mxu1 %vm623_vm1, %v606_v42 }
  0xe2   : > { %1547 = vmatmul.msk.f32.gmra.mxu3 %vm623_vm1, %v614_v46 }
  0xe4   : > { %1540 = vmatmul.msk.f32.gmra.mxu1 %vm623_vm1, %v607_v47 }
 0x121   : > { %v1783_v48 = vpop.f32.mrf.mxu1 }
 0x129   : > { %v692_v45 = vpop.f32.mrf.mxu1 }
 0x12a   : > { %v1793_v49 = vadd.f32 %v1790_v37, %v692_v45 }
 0x131   : > { %v1795_v50 = vpop.f32.mrf.mxu1 }
 0x135   : > { %v716_v51 = vpop.f32.mrf.mxu3 }
 0x136   : > { %v717_v23 = vadd.f32 %v1790_v37, %v716_v51 }
 0x138   : > { %v746_v36 = vmul.f32 0.01, %v717_v23 }
 0x139   : > { %v1797_v52 = vpop.f32.mrf.mxu1 }
 0x13a   : > { %v1855_v45 = vmax.f32 %v717_v23, %v746_v36 }
 0x13d   : > { %v719_v53 = vpop.f32.mrf.mxu3 }
 0x13e   : > { %v720_v14 = vadd.f32 %v1790_v37, %v719_v53  ;;  %v696_v53 = vadd.f32 %v1790_v37, %v1795_v50  ;;  %v920_v50 = vmul.f32 %v1826_v22, %v1855_v45 }
 0x140   : > { %v747_v24 = vmul.f32 0.01, %v720_v14 }
 0x141   : > { %v701_v54 = vpop.f32.mrf.mxu1 }
 0x142   : > { %v1845_v38 = vmax.f32 %v720_v14, %v747_v24  ;;  %v702_v40 = vadd.f32 %v1790_v37, %v701_v54  ;;  %v699_v54 = vadd.f32 %v1790_v37, %v1797_v52  ;;  %v690_v52 = vadd.f32 %v1790_v37, %v1783_v48  ;;  %v769_v24 = vld [vmem:[%s1892_s19] sm:$0xff] }
 0x143   : > { %v773_v36 = vunpack.c.0.s8 %v769_v24 }
 0x144   : > { %v921_v51 = vmul.f32 %v1803_v62, %v1845_v38  ;;  %v737_v48 = vmul.f32 0.01, %v690_v52 }
 0x145   : > { %v722_v55 = vpop.f32.mrf.mxu3 }
 0x146   : > { %v723_v9 = vadd.f32 %v1790_v37, %v722_v55  ;;  %v1863_v55 = vpop.permute.xlu1 %851 }
 0x148   : > { %v748_v18 = vmul.f32 0.01, %v723_v9 }
 0x149   : > { %v704_v56 = vpop.f32.mrf.mxu1 }
 0x14a   : > { %v1835_v28 = vmax.f32 %v723_v9, %v748_v18  ;;  %v705_v41 = vadd.f32 %v1790_v37, %v704_v56  ;;  %v741_v56 = vmul.f32 0.01, %v702_v40 }
 0x14c   : > { %v922_v42 = vmul.f32 %v1811_v5, %v1835_v28  ;;  %v1879_v9 = vmax.f32 %v702_v40, %v741_v56 }
 0x14d   : > { %v725_v57 = vpop.f32.mrf.mxu3 }
 0x14e   : > { %v726_v6 = vadd.f32 %v1790_v37, %v725_v57  ;;  %v742_v57 = vmul.f32 0.01, %v705_v41  ;;  %v915_v18 = vmul.f32 %v1863_v55, %v1879_v9  ;;  %v1903_v23 = vpop.permute.xlu1 %846 }
 0x150   : > { %v749_v15 = vmul.f32 0.01, %v726_v6 }
 0x151   : > { %v707_v59 = vpop.f32.mrf.mxu1 }
 0x152   : > { %v1829_v25 = vmax.f32 %v726_v6, %v749_v15  ;;  %v708_v29 = vadd.f32 %v1790_v37, %v707_v59  ;;  %v739_v6 = vmul.f32 0.01, %v696_v53 }
 0x154   : > { %v923_v39 = vmul.f32 %v1801_v61, %v1829_v25  ;;  %v743_v43 = vmul.f32 0.01, %v708_v29  ;;  %v1895_v14 = vmax.f32 %v696_v53, %v739_v6  ;;  %v776_v53 = vunpack.c.3.s8 %v769_v24 }
 0x155   : > { %v728_v60 = vpop.f32.mrf.mxu3 }
 0x156   : > { %v729_v4 = vadd.f32 %v1790_v37, %v728_v60  ;;  %v1865_v59 = vmax.f32 %v708_v29, %v743_v43  ;;  %v792_v56 = vcvt.s32.f32 %v776_v53 }
 0x158   : > { %v750_v11 = vmul.f32 0.01, %v729_v4 }
 0x159   : > { %v710_v0 = vpop.f32.mrf.mxu1 }
 0x15a   : > { %v1821_v19 = vmax.f32 %v729_v4, %v750_v11  ;;  %v711_v30 = vadd.f32 %v1790_v37, %v710_v0  ;;  %v932_v0 = vpack.c.bf16 %v922_v42, %v921_v51  ;;  %v1877_v4 = vpop.permute.xlu0 %841  ;;  %v789_v42 = vcvt.s32.f32 %v773_v36 }
 0x15b   : > { %v775_v51 = vunpack.c.2.s8 %v769_v24 }
 0x15c   : > { %v924_v33 = vmul.f32 %v1808_v3, %v1821_v19  ;;  %v744_v44 = vmul.f32 0.01, %v711_v30 }
 0x15d   : > { %v731_v1 = vpop.f32.mrf.mxu3 }
 0x15e   : > { %v732_v2 = vadd.f32 %v1790_v37, %v731_v1  ;;  %v933_v47 = vpack.c.bf16 %v924_v33, %v923_v39  ;;  %v1867_v60 = vmax.f32 %v711_v30, %v744_v44  ;;  %v913_v30 = vmul.f32 %v1877_v4, %v1895_v14 }
 0x15f   : > { %v774_v39 = vunpack.c.1.s8 %v769_v24 }
 0x160   : > { %v751_v7 = vmul.f32 0.01, %v732_v2 }
 0x161   : > { %v713_v13 = vpop.f32.mrf.mxu1  ;;  %v790_v43 = vcvt.s32.f32 %v774_v39 }
 0x162   : > { %v1819_v16 = vmax.f32 %v732_v2, %v751_v7  ;;  %v714_v20 = vadd.f32 %v1790_v37, %v713_v13  ;;  %v1875_v2 = vpop.permute.xlu2 %856  ;;  %v740_v7 = vmul.f32 0.01, %v699_v54  ;;  %v918_v13 = vmul.f32 %v1841_v34, %v1867_v60 }
 0x164   : > { %v925_v26 = vmul.f32 %v1799_v58, %v1819_v16  ;;  %v745_v31 = vmul.f32 0.01, %v714_v20  ;;  %v1897_v15 = vmax.f32 %v699_v54, %v740_v7  ;;  %v791_v54 = vcvt.s32.f32 %v775_v51 }
 0x165   : > { %v734_v10 = vpop.f32.mrf.mxu3 }
 0x166   : > { %v735_v12 = vadd.f32 %v1790_v37, %v734_v10  ;;  %v1853_v46 = vmax.f32 %v714_v20, %v745_v31  ;;  %v1881_v10 = vmax.f32 %v705_v41, %v742_v57  ;;  %v738_v37 = vmul.f32 0.01, %v1793_v49 }
 0x167   : > { %v914_v31 = vmul.f32 %v1903_v23, %v1897_v15  ;;  %v1926_v57 = vpack.c.bf16 %v792_v56, %v791_v54 }
 0x168   : > { %v752_v17 = vmul.f32 0.01, %v735_v12  ;;  %v919_v1 = vmul.f32 %v1814_v8, %v1853_v46  ;;  %v916_v20 = vmul.f32 %v1875_v2, %v1881_v10 }
 0x169   : > { %v928_v40 = vpack.c.bf16 %v914_v31, %v913_v30 }
 0x16a   : > { %v1824_v21 = vmax.f32 %v735_v12, %v752_v17  ;;  %v931_v11 = vpack.c.bf16 %v920_v50, %v919_v1  ;;  %v917_v12 = vmul.f32 %v1843_v35, %v1865_v59  ;;  %v929_v29 = vpack.c.bf16 %v916_v20, %v915_v18  ;;  %v1917_v33 = vpop.permute.xlu2 %831 }
 0x16c   : > { %v926_v27 = vmul.f32 %v1805_v63, %v1824_v21  ;;  %v930_v17 = vpack.c.bf16 %v918_v13, %v917_v12 }
 0x16e   : > { %v934_v32 = vpack.c.bf16 %v926_v27, %v925_v26  ;;  %v1906_v26 = vmax.f32 %v690_v52, %v737_v48  ;;  %v1909_v27 = vmax.f32 %v1793_v49, %v738_v37 }
 0x170   : > { %935 = vmatpush.bf16.msrb.mxu2 %v934_v32  ;;  %v1915_v32 = vpop.permute.xlu0 %836  ;;  %v911_v49 = vmul.f32 %v1917_v33, %v1906_v26 }
 0x171   : > { %v912_v41 = vmul.f32 %v1915_v32, %v1909_v27 }
 0x173   : > { %v927_v44 = vpack.c.bf16 %v912_v41, %v911_v49  ;;  %v772_v41 = vld [vmem:[%s1892_s19 + $0x18] sm:$0xff] }
 0x174   : > { %936 = vmatpush.bf16.msrb.mxu2 %v933_v47  ;;  %v1923_v47 = vpack.c.bf16 %v790_v43, %v789_v42  ;;  %v785_v42 = vunpack.c.0.s8 %v772_v41  ;;  %v786_v43 = vunpack.c.1.s8 %v772_v41  ;;  %v787_v54 = vunpack.c.2.s8 %v772_v41 }
 0x175   : > { %v788_v56 = vunpack.c.3.s8 %v772_v41  ;;  %v909_v41 = vlaneseq }
 0x176   : > { %v802_v51 = vcvt.s32.f32 %v786_v43 }
 0x178   : > { %937 = vmatpush.bf16.msrb.mxu2 %v932_v0  ;;  %v770_v0 = vld [vmem:[%s1892_s19 + $0x8] sm:$0xff] }
 0x179   : > { %v777_v1 = vunpack.c.0.s8 %v770_v0  ;;  %v778_v50 = vunpack.c.1.s8 %v770_v0  ;;  %v780_v12 = vunpack.c.3.s8 %v770_v0 }
 0x17b   : > { %v793_v52 = vcvt.s32.f32 %v777_v1  ;;  %v794_v6 = vcvt.s32.f32 %v778_v50  ;;  %v796_v48 = vcvt.s32.f32 %v780_v12  ;;  %v804_v1 = vcvt.s32.f32 %v788_v56 }
 0x17c   : > { %938 = vmatpush.bf16.msrb.mxu2 %v931_v11  ;;  %v779_v11 = vunpack.c.2.s8 %v770_v0  ;;  %v803_v0 = vcvt.s32.f32 %v787_v54 }
 0x17d   : > { %v1930_v7 = vpack.c.bf16 %v794_v6, %v793_v52 }
 0x17e   : > { %v795_v13 = vcvt.s32.f32 %v779_v11  ;;  %v1947_v50 = vpack.c.bf16 %v804_v1, %v803_v0 }
 0x180   : > { %939 = vmatpush.bf16.msrb.mxu2 %v930_v17  ;;  %v1933_v37 = vpack.c.bf16 %v796_v48, %v795_v13  ;;  %v771_v17 = vld [vmem:[%s1892_s19 + $0x10] sm:$0xff]  ;;  %2451 = vst [vmem:[#allocation3_spill] sm:$0xff] %v1947_v50 }
 0x181   : > { %v781_v18 = vunpack.c.0.s8 %v771_v17  ;;  %v782_v20 = vunpack.c.1.s8 %v771_v17  ;;  %v783_v31 = vunpack.c.2.s8 %v771_v17  ;;  %v784_v36 = vunpack.c.3.s8 %v771_v17 }
 0x183   : > { %v797_v24 = vcvt.s32.f32 %v781_v18  ;;  %v799_v39 = vcvt.s32.f32 %v783_v31 }
 0x184   : > { %940 = vmatpush.bf16.msrb.mxu2 %v929_v29  ;;  %v798_v29 = vcvt.s32.f32 %v782_v20 }
 0x186   : > { %v1937_v30 = vpack.c.bf16 %v798_v29, %v797_v24 }
 0x188   : > { %941 = vmatpush.bf16.msrb.mxu2 %v928_v40  ;;  %v800_v40 = vcvt.s32.f32 %v784_v36 }
 0x18a   : > { %v1940_v49 = vpack.c.bf16 %v800_v40, %v799_v39 }
 0x18c   : > { %942 = vmatpush.bf16.msrb.mxu2 %v927_v44  ;;  %v801_v44 = vcvt.s32.f32 %v785_v42 }
 0x18e   : > { %v1944_v53 = vpack.c.bf16 %v802_v51, %v801_v44  ;;  %v1958_v44 = vand.u32 127, %v909_v41 }
 0x18f   : > { %943 = vmatmul.bf16.vlgmr.msrb.gmra.mxu2 %v1923_v47 }
 0x190   : > { %2450 = vst [vmem:[#allocation2_spill] sm:$0xff] %v1944_v53  ;;  %vm984_vm2 = vcmp.ge.s32.totalorder %v1958_v44, 32  ;;  %vm1106_vm3 = vcmp.ge.s32.totalorder %v1958_v44, 64  ;;  %vm1228_vm4 = vcmp.ge.s32.totalorder %v1958_v44, 96 }
 0x19f   : > { %948 = vmatmul.bf16.gmra.mxu2 %v1926_v57 }
 0x1af   : > { %953 = vmatmul.bf16.gmra.mxu2 %v1930_v7 }
 0x1bf   : > { %958 = vmatmul.bf16.gmra.mxu2 %v1933_v37 }
 0x1cf   : > { %963 = vmatmul.bf16.gmra.mxu2 %v1937_v30 }
 0x1df   : > { %968 = vmatmul.bf16.gmra.mxu2 %v1940_v49 }
 0x1ef   : > { %973 = vmatmul.bf16.gmra.mxu2 %v1944_v53 }
 0x1ff   : > { %978 = vmatmul.bf16.gmra.mxu2 %v1947_v50 }
 0x212   : > { %v1950_v52 = vpop.f32.mrf.mxu2 }
 0x21a   : > { %v1952_v6 = vpop.f32.mrf.mxu2 }
 0x222   : > { %v1954_v11 = vpop.f32.mrf.mxu2 }
 0x22a   : > { %v951_v12 = vpop.f32.mrf.mxu2 }
 0x232   : > { %v954_v13 = vpop.f32.mrf.mxu2 }
 0x23a   : > { %v956_v48 = vpop.f32.mrf.mxu2 }
 0x242   : > { %v959_v17 = vpop.f32.mrf.mxu2 }
 0x24a   : > { %v961_v18 = vpop.f32.mrf.mxu2 }
 0x252   : > { %v964_v20 = vpop.f32.mrf.mxu2 }
 0x25a   : > { %v966_v24 = vpop.f32.mrf.mxu2 }
 0x25b   : > { %v994_v41 = vmul.f32 %v966_v24, %v1826_v22  ;;  %v993_v24 = vmul.f32 %v964_v20, %v1814_v8 }
 0x25d   : > { %v1009_v20 = vsub.f32 %v1853_v46, %v993_v24 }
 0x262   : > { %v969_v29 = vpop.f32.mrf.mxu2 }
 0x263   : > { %v995_v53 = vmul.f32 %v969_v29, %v1803_v62 }
 0x26a   : > { %v971_v31 = vpop.f32.mrf.mxu2 }
 0x26b   : > { %v996_v0 = vmul.f32 %v971_v31, %v1811_v5 }
 0x26d   : > { %v1012_v31 = vsub.f32 %v1835_v28, %v996_v0 }
 0x26f   : > { %v2004_v0 = vsel %vm984_vm2, %v1012_v31, %v1835_v28  ;;  %v990_v28 = vmul.f32 %v956_v48, %v1875_v2 }
 0x271   : > { %v1006_v24 = vsub.f32 %v1881_v10, %v990_v28 }
 0x272   : > { %v974_v36 = vpop.f32.mrf.mxu2 }
 0x273   : > { %v997_v51 = vmul.f32 %v974_v36, %v1801_v61 }
 0x27a   : > { %v976_v39 = vpop.f32.mrf.mxu2 }
 0x27b   : > { %v998_v43 = vmul.f32 %v976_v39, %v1808_v3 }
 0x27d   : > { %v1014_v1 = vsub.f32 %v1821_v19, %v998_v43  ;;  %v1011_v43 = vsub.f32 %v1845_v38, %v995_v53 }
 0x282   : > { %v979_v40 = vpop.f32.mrf.mxu2 }
 0x283   : > { %v999_v42 = vmul.f32 %v979_v40, %v1799_v58  ;;  %v1013_v40 = vsub.f32 %v1829_v25, %v997_v51 }
 0x285   : > { %v1015_v54 = vsub.f32 %v1819_v16, %v999_v42  ;;  %v1979_v42 = vsel %vm984_vm2, %v1014_v1, %v1821_v19  ;;  %v1995_v19 = vsel %vm984_vm2, %v1013_v40, %v1829_v25  ;;  %v991_v25 = vmul.f32 %v959_v17, %v1843_v35 }
 0x286   : > { %v1045_v53 = vmul.f32 %v1995_v19, %v1801_v61  ;;  %v2013_v1 = vsel %vm984_vm2, %v1011_v43, %v1845_v38  ;;  %v1044_v40 = vmul.f32 %v2004_v0, %v1811_v5  ;;  %v989_v38 = vmul.f32 %v954_v13, %v1863_v55 }
 0x287   : > { %v1971_v39 = vsel %vm984_vm2, %v1015_v54, %v1819_v16  ;;  %v992_v54 = vmul.f32 %v961_v18, %v1841_v34  ;;  %v1043_v17 = vmul.f32 %v2013_v1, %v1803_v62  ;;  %v1007_v31 = vsub.f32 %v1865_v59, %v991_v25 }
 0x288   : > { %v1047_v16 = vmul.f32 %v1971_v39, %v1799_v58 }
 0x289   : > { %v1054_v48 = vpack.c.bf16 %v1044_v40, %v1043_v17 }
 0x28a   : > { %v981_v56 = vpop.f32.mrf.mxu2 }
 0x28b   : > { %v1000_v50 = vmul.f32 %v981_v56, %v1805_v63  ;;  %v1010_v56 = vsub.f32 %v1855_v45, %v994_v41 }
 0x28d   : > { %v1016_v36 = vsub.f32 %v1824_v21, %v1000_v50  ;;  %v2022_v41 = vsel %vm984_vm2, %v1010_v56, %v1855_v45  ;;  %v988_v45 = vmul.f32 %v951_v12, %v1903_v23  ;;  %v2050_v12 = vsel %vm984_vm2, %v1007_v31, %v1865_v59 }
 0x28e   : > { %v985_v59 = vmul.f32 %v1950_v52, %v1917_v33 }
 0x28f   : > { %v1984_v29 = vsel %vm984_vm2, %v1016_v36, %v1824_v21  ;;  %v1046_v21 = vmul.f32 %v1979_v42, %v1808_v3  ;;  %v1008_v36 = vsub.f32 %v1867_v60, %v992_v54  ;;  %v1004_v56 = vsub.f32 %v1897_v15, %v988_v45 }
 0x290   : > { %v1048_v50 = vmul.f32 %v1984_v29, %v1805_v63  ;;  %v1001_v28 = vsub.f32 %v1906_v26, %v985_v59 }
 0x291   : > { %v1055_v18 = vpack.c.bf16 %v1046_v21, %v1045_v53  ;;  %v2040_v43 = vsel %vm984_vm2, %v1008_v36, %v1867_v60  ;;  %v986_v60 = vmul.f32 %v1952_v6, %v1915_v32  ;;  %v1039_v53 = vmul.f32 %v2050_v12, %v1843_v35 }
 0x292   : > { %v1056_v51 = vpack.c.bf16 %v1048_v50, %v1047_v16  ;;  %v2031_v16 = vsel %vm984_vm2, %v1009_v20, %v1853_v46  ;;  %v1042_v50 = vmul.f32 %v2022_v41, %v1826_v22  ;;  %v987_v46 = vmul.f32 %v1954_v11, %v1877_v4 }
 0x293   : > { %v1041_v13 = vmul.f32 %v2031_v16, %v1814_v8  ;;  %v1040_v54 = vmul.f32 %v2040_v43, %v1841_v34  ;;  %v2060_v11 = vsel %vm984_vm2, %v1006_v24, %v1881_v10  ;;  %v1002_v10 = vsub.f32 %v1909_v27, %v986_v60 }
 0x294   : > { %1057 = vmatpush.bf16.msra.mxu3 %v1056_v51  ;;  %v1005_v51 = vsub.f32 %v1879_v9, %v989_v38  ;;  %v1003_v25 = vsub.f32 %v1895_v14, %v987_v46  ;;  %v2078_v40 = vsel %vm984_vm2, %v1004_v56, %v1897_v15  ;;  %v2100_v31 = vsel %vm984_vm2, %v1001_v28, %v1906_v26  ;;  %v2452_v26 = vld [vmem:[#allocation2_spill] sm:$0xff] }
 0x295   : > { %v1053_v21 = vpack.c.bf16 %v1042_v50, %v1041_v13  ;;  %v1052_v20 = vpack.c.bf16 %v1040_v54, %v1039_v53  ;;  %v1036_v17 = vmul.f32 %v2078_v40, %v1903_v23  ;;  %v2093_v15 = vsel %vm984_vm2, %v1002_v10, %v1909_v27  ;;  %v2453_v27 = vld [vmem:[#allocation3_spill] sm:$0xff] }
 0x296   : > { %v2070_v6 = vsel %vm984_vm2, %v1005_v51, %v1879_v9  ;;  %v2086_v9 = vsel %vm984_vm2, %v1003_v25, %v1895_v14  ;;  %v1033_v50 = vmul.f32 %v2100_v31, %v1917_v33 }
 0x297   : > { %v1037_v52 = vmul.f32 %v2070_v6, %v1863_v55  ;;  %v1035_v38 = vmul.f32 %v2086_v9, %v1877_v4 }
 0x298   : > { %1058 = vmatpush.bf16.msra.mxu3 %v1055_v18  ;;  %v1038_v18 = vmul.f32 %v2060_v11, %v1875_v2 }
 0x299   : > { %v1050_v14 = vpack.c.bf16 %v1036_v17, %v1035_v38 }
 0x29a   : > { %v1051_v36 = vpack.c.bf16 %v1038_v18, %v1037_v52 }
 0x29c   : > { %1059 = vmatpush.bf16.msra.mxu3 %v1054_v48  ;;  %v1034_v48 = vmul.f32 %v2093_v15, %v1915_v32 }
 0x29e   : > { %v1049_v45 = vpack.c.bf16 %v1034_v48, %v1033_v50 }
 0x2a0   : > { %1060 = vmatpush.bf16.msra.mxu3 %v1053_v21 }
 0x2a4   : > { %1061 = vmatpush.bf16.msra.mxu3 %v1052_v20 }
 0x2a8   : > { %1062 = vmatpush.bf16.msra.mxu3 %v1051_v36 }
 0x2ac   : > { %1063 = vmatpush.bf16.msra.mxu3 %v1050_v14 }
 0x2b0   : > { %1064 = vmatpush.bf16.msra.mxu3 %v1049_v45 }
 0x2b3   : > { %1065 = vmatmul.bf16.vlgmr.msra.gmra.mxu3 %v1923_v47 }
 0x2c3   : > { %1070 = vmatmul.bf16.gmra.mxu3 %v1926_v57 }
 0x2d3   : > { %1075 = vmatmul.bf16.gmra.mxu3 %v1930_v7 }
 0x2e3   : > { %1080 = vmatmul.bf16.gmra.mxu3 %v1933_v37 }
 0x2f3   : > { %1085 = vmatmul.bf16.gmra.mxu3 %v1937_v30 }
 0x303   : > { %1090 = vmatmul.bf16.gmra.mxu3 %v1940_v49 }
 0x313   : > { %1095 = vmatmul.bf16.gmra.mxu3 %v2452_v26 }
 0x323   : > { %1100 = vmatmul.bf16.gmra.mxu3 %v2453_v27 }
 0x336   : > { %v2114_v24 = vpop.f32.mrf.mxu3 }
 0x33e   : > { %v2116_v13 = vpop.f32.mrf.mxu3 }
 0x346   : > { %v1071_v46 = vpop.f32.mrf.mxu3 }
 0x34e   : > { %v1073_v51 = vpop.f32.mrf.mxu3 }
 0x356   : > { %v1076_v21 = vpop.f32.mrf.mxu3 }
 0x35e   : > { %v1078_v54 = vpop.f32.mrf.mxu3 }
 0x366   : > { %v1081_v60 = vpop.f32.mrf.mxu3 }
 0x36e   : > { %v1083_v56 = vpop.f32.mrf.mxu3 }
 0x376   : > { %v1086_v53 = vpop.f32.mrf.mxu3 }
 0x37e   : > { %v1088_v59 = vpop.f32.mrf.mxu3 }
 0x386   : > { %v1091_v25 = vpop.f32.mrf.mxu3 }
 0x387   : > { %v1117_v27 = vmul.f32 %v1091_v25, %v1803_v62 }
 0x38e   : > { %v1093_v20 = vpop.f32.mrf.mxu3 }
 0x38f   : > { %v1118_v48 = vmul.f32 %v1093_v20, %v1811_v5 }
 0x391   : > { %v1134_v20 = vsub.f32 %v2004_v0, %v1118_v48 }
 0x396   : > { %v1096_v18 = vpop.f32.mrf.mxu3 }
 0x397   : > { %v1119_v17 = vmul.f32 %v1096_v18, %v1801_v61 }
 0x399   : > { %v1135_v26 = vsub.f32 %v1995_v19, %v1119_v17  ;;  %v1133_v17 = vsub.f32 %v2013_v1, %v1117_v27 }
 0x39e   : > { %v1098_v10 = vpop.f32.mrf.mxu3 }
 0x39f   : > { %v1120_v36 = vmul.f32 %v1098_v10, %v1808_v3  ;;  %v1116_v10 = vmul.f32 %v1088_v59, %v1826_v22  ;;  %v1115_v59 = vmul.f32 %v1086_v53, %v1814_v8  ;;  %v2173_v53 = vsel %vm1106_vm3, %v1133_v17, %v2013_v1 }
 0x3a0   : > { %v1111_v1 = vmul.f32 %v1076_v21, %v1863_v55 }
 0x3a1   : > { %v1136_v50 = vsub.f32 %v1979_v42, %v1120_v36  ;;  %v1132_v48 = vsub.f32 %v2022_v41, %v1116_v10 }
 0x3a3   : > { %v2144_v25 = vsel %vm1106_vm3, %v1136_v50, %v1979_v42  ;;  %v2164_v50 = vsel %vm1106_vm3, %v1134_v20, %v2004_v0  ;;  %v1112_v0 = vmul.f32 %v1078_v54, %v1875_v2  ;;  %v2182_v10 = vsel %vm1106_vm3, %v1132_v48, %v2022_v41 }
 0x3a4   : > { %v1168_v42 = vmul.f32 %v2144_v25, %v1808_v3  ;;  %v1110_v41 = vmul.f32 %v1073_v51, %v1903_v23 }
 0x3a6   : > { %v1101_v52 = vpop.f32.mrf.mxu3  ;;  %v1126_v48 = vsub.f32 %v2078_v40, %v1110_v41 }
 0x3a7   : > { %v1121_v28 = vmul.f32 %v1101_v52, %v1799_v58 }
 0x3a9   : > { %v1137_v38 = vsub.f32 %v1971_v39, %v1121_v28 }
 0x3ab   : > { %v2132_v18 = vsel %vm1106_vm3, %v1137_v38, %v1971_v39 }
 0x3ac   : > { %v1169_v36 = vmul.f32 %v2132_v18, %v1799_v58 }
 0x3ae   : > { %v1103_v14 = vpop.f32.mrf.mxu3 }
 0x3af   : > { %v1122_v45 = vmul.f32 %v1103_v14, %v1805_v63  ;;  %v1114_v14 = vmul.f32 %v1083_v56, %v1841_v34 }
 0x3b1   : > { %v1138_v52 = vsub.f32 %v1984_v29, %v1122_v45  ;;  %v1166_v45 = vmul.f32 %v2164_v50, %v1811_v5 }
 0x3b3   : > { %v2139_v28 = vsel %vm1106_vm3, %v1138_v52, %v1984_v29  ;;  %v2155_v29 = vsel %vm1106_vm3, %v1135_v26, %v1995_v19  ;;  %v1113_v19 = vmul.f32 %v1081_v60, %v1843_v35  ;;  %v1131_v26 = vsub.f32 %v2031_v16, %v1115_v59 }
 0x3b4   : > { %v1170_v39 = vmul.f32 %v2139_v28, %v1805_v63  ;;  %v1167_v27 = vmul.f32 %v2155_v29, %v1801_v61  ;;  %v1130_v52 = vsub.f32 %v2040_v43, %v1114_v14  ;;  %v1165_v60 = vmul.f32 %v2173_v53, %v1803_v62 }
 0x3b5   : > { %v1129_v20 = vsub.f32 %v2050_v12, %v1113_v19  ;;  %v1128_v59 = vsub.f32 %v2060_v11, %v1112_v0 }
 0x3b6   : > { %v1178_v38 = vpack.c.bf16 %v1170_v39, %v1169_v36  ;;  %v1177_v56 = vpack.c.bf16 %v1168_v42, %v1167_v27  ;;  %v2191_v36 = vsel %vm1106_vm3, %v1131_v26, %v2031_v16  ;;  %v1176_v54 = vpack.c.bf16 %v1166_v45, %v1165_v60 }
 0x3b7   : > { %v1164_v39 = vmul.f32 %v2182_v10, %v1826_v22  ;;  %v2200_v17 = vsel %vm1106_vm3, %v1130_v52, %v2040_v43  ;;  %v1163_v21 = vmul.f32 %v2191_v36, %v1814_v8  ;;  %v1109_v16 = vmul.f32 %v1071_v46, %v1877_v4 }
 0x3b8   : > { %1179 = vmatpush.bf16.msrb.mxu1 %v1178_v38  ;;  %v1127_v38 = vsub.f32 %v2070_v6, %v1111_v1  ;;  %v2209_v42 = vsel %vm1106_vm3, %v1129_v20, %v2050_v12  ;;  %v1162_v14 = vmul.f32 %v2200_v17, %v1841_v34  ;;  %v1108_v43 = vmul.f32 %v2116_v13, %v1915_v32 }
 0x3b9   : > { %v1175_v51 = vpack.c.bf16 %v1164_v39, %v1163_v21  ;;  %v2219_v46 = vsel %vm1106_vm3, %v1128_v59, %v2060_v11  ;;  %v1161_v27 = vmul.f32 %v2209_v42, %v1843_v35  ;;  %v1107_v12 = vmul.f32 %v2114_v24, %v1917_v33  ;;  %v1285_v59 = vld [vmem:[%s2443_s7 + $0x40] sm:$0xff]  ;;  %v1284_v21 = vld [vmem:[%s2443_s7 + $0x38] sm:$0xff] }
 0x3ba   : > { %v1125_v19 = vsub.f32 %v2086_v9, %v1109_v16  ;;  %v2229_v13 = vsel %vm1106_vm3, %v1127_v38, %v2070_v6  ;;  %v1124_v11 = vsub.f32 %v2093_v15, %v1108_v43  ;;  %v2237_v45 = vsel %vm1106_vm3, %v1126_v48, %v2078_v40  ;;  %v1283_v16 = vld [vmem:[%s2443_s7 + $0x30] sm:$0xff]  ;;  %v1282_v38 = vld [vmem:[%s2443_s7 + $0x28] sm:$0xff]  ;;  %v2454_v48 = vld [vmem:[#allocation2_spill] sm:$0xff] }
 0x3bb   : > { %v1174_v26 = vpack.c.bf16 %v1162_v14, %v1161_v27  ;;  %v1159_v24 = vmul.f32 %v2229_v13, %v1863_v55  ;;  %v1123_v0 = vsub.f32 %v2100_v31, %v1107_v12  ;;  %v1158_v60 = vmul.f32 %v2237_v45, %v1903_v23  ;;  %v1279_v14 = vld [vmem:[%s2443_s7 + $0x10] sm:$0xff]  ;;  %v1278_v43 = vld [vmem:[%s2443_s7 + $0x8] sm:$0xff]  ;;  %v1277_v27 = vld [vmem:[%s2443_s7] sm:$0xff] }
 0x3bc   : > { %1180 = vmatpush.bf16.msrb.mxu1 %v1177_v56  ;;  %v1160_v56 = vmul.f32 %v2219_v46, %v1875_v2  ;;  %v2245_v6 = vsel %vm1106_vm3, %v1125_v19, %v2086_v9  ;;  %v1140_v40 = vsel %vm1106_vm3, %v1124_v11, %v2093_v15  ;;  %v1292_v15 = vld [vmem:[%s2443_s7 + $0x78] sm:$0xff]  ;;  %v2455_v12 = vld [vmem:[#allocation3_spill] sm:$0xff] }
 0x3bd   : > { %v1157_v1 = vmul.f32 %v2245_v6, %v1877_v4  ;;  %v1139_v20 = vsel %vm1106_vm3, %v1123_v0, %v2100_v31  ;;  %v1156_v9 = vmul.f32 %v1140_v40, %v1915_v32  ;;  %v1291_v31 = vld [vmem:[%s2443_s7 + $0x70] sm:$0xff]  ;;  %1297 = vmatpush.msrb.mxu0 %v1292_v15 }
 0x3be   : > { %v1173_v52 = vpack.c.bf16 %v1160_v56, %v1159_v24  ;;  %v1155_v39 = vmul.f32 %v1139_v20, %v1917_v33 }
 0x3bf   : > { %1298 = vmatpush.msrb.mxu0 %v1291_v31 }
 0x3c0   : > { %1181 = vmatpush.bf16.msrb.mxu1 %v1176_v54  ;;  %v1172_v54 = vpack.c.bf16 %v1158_v60, %v1157_v1  ;;  %v1171_v41 = vpack.c.bf16 %v1156_v9, %v1155_v39 }
 0x3c4   : > { %1182 = vmatpush.bf16.msrb.mxu1 %v1175_v51  ;;  %v1280_v51 = vld [vmem:[%s2443_s7 + $0x18] sm:$0xff] }
 0x3c8   : > { %1183 = vmatpush.bf16.msrb.mxu1 %v1174_v26 }
 0x3cc   : > { %1184 = vmatpush.bf16.msrb.mxu1 %v1173_v52 }
 0x3d0   : > { %1185 = vmatpush.bf16.msrb.mxu1 %v1172_v54 }
 0x3d4   : > { %1186 = vmatpush.bf16.msrb.mxu1 %v1171_v41 }
 0x3d7   : > { %1187 = vmatmul.bf16.vlgmr.msrb.gmra.mxu1 %v1923_v47  ;;  %v1290_v47 = vld [vmem:[%s2443_s7 + $0x68] sm:$0xff] }
 0x3d8   : > { %1299 = vmatpush.msrb.mxu0 %v1290_v47 }
 0x3e7   : > { %1192 = vmatmul.bf16.gmra.mxu1 %v1926_v57  ;;  %v1289_v57 = vld [vmem:[%s2443_s7 + $0x60] sm:$0xff] }
 0x3e8   : > { %1300 = vmatpush.msrb.mxu0 %v1289_v57 }
 0x3f7   : > { %1197 = vmatmul.bf16.gmra.mxu1 %v1930_v7  ;;  %v1288_v7 = vld [vmem:[%s2443_s7 + $0x58] sm:$0xff] }
 0x3f8   : > { %1301 = vmatpush.msrb.mxu0 %v1288_v7 }
 0x407   : > { %1202 = vmatmul.bf16.gmra.mxu1 %v1933_v37  ;;  %v1287_v37 = vld [vmem:[%s2443_s7 + $0x50] sm:$0xff] }
 0x408   : > { %1302 = vmatpush.msrb.mxu0 %v1287_v37 }
 0x417   : > { %1207 = vmatmul.bf16.gmra.mxu1 %v1937_v30  ;;  %v1286_v30 = vld [vmem:[%s2443_s7 + $0x48] sm:$0xff] }
 0x418   : > { %1303 = vmatpush.msrb.mxu0 %v1286_v30 }
 0x41a   : > { %1304 = vmatpush.msrb.mxu0 %v1285_v59 }
 0x41c   : > { %1305 = vmatpush.msrb.mxu0 %v1284_v21 }
 0x41e   : > { %1306 = vmatpush.msrb.mxu0 %v1283_v16 }
 0x420   : > { %1307 = vmatpush.msrb.mxu0 %v1282_v38 }
 0x427   : > { %1212 = vmatmul.bf16.gmra.mxu1 %v1940_v49  ;;  %v1281_v49 = vld [vmem:[%s2443_s7 + $0x20] sm:$0xff] }
 0x428   : > { %1308 = vmatpush.msrb.mxu0 %v1281_v49 }
 0x42a   : > { %1309 = vmatpush.msrb.mxu0 %v1280_v51 }
 0x42c   : > { %1310 = vmatpush.msrb.mxu0 %v1279_v14 }
 0x42e   : > { %1311 = vmatpush.msrb.mxu0 %v1278_v43 }
 0x430   : > { %1312 = vmatpush.msrb.mxu0 %v1277_v27 }
 0x437   : > { %1217 = vmatmul.bf16.gmra.mxu1 %v2454_v48 }
 0x447   : > { %1222 = vmatmul.bf16.gmra.mxu1 %v2455_v12 }
 0x454   : > { %v1188_v19 = vpop.f32.mrf.mxu1 }
 0x455   : > { %v1229_v26 = vmul.f32 %v1188_v19, %v1917_v33 }
 0x457   : > { %v1245_v56 = vsub.f32 %v1139_v20, %v1229_v26 }
 0x459   : > { %v1261_v11 = vsel %vm1228_vm4, %v1245_v56, %v1139_v20 }
 0x45a   : > { %1313 = vmatmul.f32.vlgmr.msrb.gmra.mxu0 %v1261_v11 }
 0x45c   : > { %v1190_v24 = vpop.f32.mrf.mxu1 }
 0x45d   : > { %v1230_v0 = vmul.f32 %v1190_v24, %v1915_v32 }
 0x45f   : > { %v1246_v52 = vsub.f32 %v1140_v40, %v1230_v0 }
 0x461   : > { %v1262_v60 = vsel %vm1228_vm4, %v1246_v52, %v1140_v40 }
 0x462   : > { %1316 = vmatmul.f32.gmra.mxu0 %v1262_v60 }
 0x464   : > { %v1193_v1 = vpop.f32.mrf.mxu1 }
 0x465   : > { %v1231_v54 = vmul.f32 %v1193_v1, %v1877_v4 }
 0x467   : > { %v1247_v33 = vsub.f32 %v2245_v6, %v1231_v54 }
 0x469   : > { %v1263_v9 = vsel %vm1228_vm4, %v1247_v33, %v2245_v6 }
 0x46a   : > { %1319 = vmatmul.f32.gmra.mxu0 %v1263_v9 }
 0x46c   : > { %v1195_v20 = vpop.f32.mrf.mxu1 }
 0x46d   : > { %v1232_v39 = vmul.f32 %v1195_v20, %v1903_v23 }
 0x46f   : > { %v1248_v32 = vsub.f32 %v2237_v45, %v1232_v39 }
 0x471   : > { %v1264_v40 = vsel %vm1228_vm4, %v1248_v32, %v2237_v45 }
 0x472   : > { %1322 = vmatmul.f32.gmra.mxu0 %v1264_v40 }
 0x474   : > { %v1198_v41 = vpop.f32.mrf.mxu1 }
 0x475   : > { %v1233_v4 = vmul.f32 %v1198_v41, %v1863_v55 }
 0x477   : > { %v1249_v15 = vsub.f32 %v2229_v13, %v1233_v4 }
 0x479   : > { %v1265_v6 = vsel %vm1228_vm4, %v1249_v15, %v2229_v13 }
 0x47a   : > { %1325 = vmatmul.f32.gmra.mxu0 %v1265_v6 }
 0x47c   : > { %v1200_v31 = vpop.f32.mrf.mxu1 }
 0x47d   : > { %v1234_v23 = vmul.f32 %v1200_v31, %v1875_v2 }
 0x47f   : > { %v1250_v47 = vsub.f32 %v2219_v46, %v1234_v23 }
 0x481   : > { %v1266_v45 = vsel %vm1228_vm4, %v1250_v47, %v2219_v46 }
 0x482   : > { %1328 = vmatmul.f32.gmra.mxu0 %v1266_v45 }
 0x484   : > { %v1203_v57 = vpop.f32.mrf.mxu1 }
 0x485   : > { %v1235_v55 = vmul.f32 %v1203_v57, %v1843_v35 }
 0x487   : > { %v1251_v7 = vsub.f32 %v2209_v42, %v1235_v55 }
 0x489   : > { %v1267_v13 = vsel %vm1228_vm4, %v1251_v7, %v2209_v42 }
 0x48a   : > { %1331 = vmatmul.f32.gmra.mxu0 %v1267_v13 }
 0x48c   : > { %v1205_v37 = vpop.f32.mrf.mxu1 }
 0x48d   : > { %v1236_v2 = vmul.f32 %v1205_v37, %v1841_v34 }
 0x48f   : > { %v1252_v30 = vsub.f32 %v2200_v17, %v1236_v2 }
 0x491   : > { %v1268_v46 = vsel %vm1228_vm4, %v1252_v30, %v2200_v17 }
 0x492   : > { %1334 = vmatmul.f32.gmra.mxu0 %v1268_v46 }
 0x494   : > { %v1208_v59 = vpop.f32.mrf.mxu1 }
 0x495   : > { %v1237_v35 = vmul.f32 %v1208_v59, %v1814_v8 }
 0x497   : > { %v1253_v21 = vsub.f32 %v2191_v36, %v1237_v35 }
 0x499   : > { %v1269_v42 = vsel %vm1228_vm4, %v1253_v21, %v2191_v36 }
 0x49a   : > { %1337 = vmatmul.f32.gmra.mxu0 %v1269_v42 }
 0x49c   : > { %v1210_v16 = vpop.f32.mrf.mxu1 }
 0x49d   : > { %v1238_v34 = vmul.f32 %v1210_v16, %v1826_v22 }
 0x49f   : > { %v1254_v38 = vsub.f32 %v2182_v10, %v1238_v34 }
 0x4a1   : > { %v1270_v17 = vsel %vm1228_vm4, %v1254_v38, %v2182_v10 }
 0x4a2   : > { %1340 = vmatmul.f32.gmra.mxu0 %v1270_v17 }
 0x4a4   : > { %v1213_v49 = vpop.f32.mrf.mxu1 }
 0x4a5   : > { %v1239_v8 = vmul.f32 %v1213_v49, %v1803_v62 }
 0x4a7   : > { %v1255_v51 = vsub.f32 %v2173_v53, %v1239_v8 }
 0x4a9   : > { %v1271_v36 = vsel %vm1228_vm4, %v1255_v51, %v2173_v53 }
 0x4aa   : > { %1343 = vmatmul.f32.gmra.mxu0 %v1271_v36 }
 0x4ac   : > { %v1215_v14 = vpop.f32.mrf.mxu1 }
 0x4ad   : > { %v1240_v22 = vmul.f32 %v1215_v14, %v1811_v5 }
 0x4af   : > { %v1256_v43 = vsub.f32 %v2164_v50, %v1240_v22 }
 0x4b1   : > { %v1272_v10 = vsel %vm1228_vm4, %v1256_v43, %v2164_v50 }
 0x4b2   : > { %1346 = vmatmul.f32.gmra.mxu0 %v1272_v10 }
 0x4b4   : > { %v1218_v48 = vpop.f32.mrf.mxu1 }
 0x4b5   : > { %v1241_v62 = vmul.f32 %v1218_v48, %v1801_v61 }
 0x4b7   : > { %v1257_v27 = vsub.f32 %v2155_v29, %v1241_v62 }
 0x4b9   : > { %v1273_v53 = vsel %vm1228_vm4, %v1257_v27, %v2155_v29 }
 0x4ba   : > { %1349 = vmatmul.f32.gmra.mxu0 %v1273_v53 }
 0x4bc   : > { %v1220_v12 = vpop.f32.mrf.mxu1 }
 0x4bd   : > { %v1242_v5 = vmul.f32 %v1220_v12, %v1808_v3 }
 0x4bf   : > { %v1258_v19 = vsub.f32 %v2144_v25, %v1242_v5 }
 0x4c1   : > { %v1274_v50 = vsel %vm1228_vm4, %v1258_v19, %v2144_v25 }
 0x4c2   : > { %1352 = vmatmul.f32.gmra.mxu0 %v1274_v50 }
 0x4c4   : > { %v1223_v26 = vpop.f32.mrf.mxu1 }
 0x4c5   : > { %v1243_v61 = vmul.f32 %v1223_v26, %v1799_v58  ;;  %v1590_v58 = vld [vmem:[%s2444_s8] ss:$0 sm:$0xff] }
 0x4c7   : > { %v1259_v56 = vsub.f32 %v2132_v18, %v1243_v61 }
 0x4c9   : > { %v1275_v29 = vsel %vm1228_vm4, %v1259_v56, %v2132_v18 }
 0x4ca   : > { %1355 = vmatmul.f32.gmra.mxu0 %v1275_v29 }
 0x4cc   : > { %v1225_v11 = vpop.f32.mrf.mxu1 }
 0x4cd   : > { %v1244_v3 = vmul.f32 %v1225_v11, %v1805_v63 }
 0x4cf   : > { %v1260_v24 = vsub.f32 %v2139_v28, %v1244_v3 }
 0x4d1   : > { %v1276_v25 = vsel %vm1228_vm4, %v1260_v24, %v2139_v28 }
 0x4d2   : > { %1358 = vmatmul.f32.gmra.mxu0 %v1276_v25 }
 0x4d7   : > { %v1314_v63 = vpop.f32.mrf.mxu0 }
 0x4d8   : > { %v1315_v18 = vadd.f32 %v1590_v58, %v1314_v63 }
 0x4da   : > { %1362 = vst.msk [vmem:[%s2399_s18] sm:$0xff] %vm623_vm1, %v1315_v18 }
 0x4df   : > { %v1317_v44 = vpop.f32.mrf.mxu0 }
 0x4e0   : > { %v1318_v28 = vadd.f32 %v1590_v58, %v1317_v44 }
 0x4e2   : > { %1363 = vst.msk [vmem:[%s2399_s18 + $0x8] sm:$0xff] %vm623_vm1, %v1318_v28 }
 0x4e7   : > { %v1320_v0 = vpop.f32.mrf.mxu0 }
 0x4e8   : > { %v1321_v52 = vadd.f32 %v1590_v58, %v1320_v0 }
 0x4ea   : > { %1364 = vst.msk [vmem:[%s2399_s18 + $0x10] sm:$0xff] %vm623_vm1, %v1321_v52 }
 0x4ef   : > { %v1323_v60 = vpop.f32.mrf.mxu0 }
 0x4f0   : > { %v1324_v1 = vadd.f32 %v1590_v58, %v1323_v60 }
 0x4f2   : > { %1365 = vst.msk [vmem:[%s2399_s18 + $0x18] sm:$0xff] %vm623_vm1, %v1324_v1 }
 0x4f7   : > { %v1326_v54 = vpop.f32.mrf.mxu0 }
 0x4f8   : > { %v1327_v33 = vadd.f32 %v1590_v58, %v1326_v54 }
 0x4fa   : > { %1366 = vst.msk [vmem:[%s2399_s18 + $0x20] sm:$0xff] %vm623_vm1, %v1327_v33 }
 0x4ff   : > { %v1329_v9 = vpop.f32.mrf.mxu0 }
 0x500   : > { %v1330_v20 = vadd.f32 %v1590_v58, %v1329_v9 }
 0x502   : > { %1367 = vst.msk [vmem:[%s2399_s18 + $0x28] sm:$0xff] %vm623_vm1, %v1330_v20 }
 0x507   : > { %v1332_v39 = vpop.f32.mrf.mxu0 }
 0x508   : > { %v1333_v32 = vadd.f32 %v1590_v58, %v1332_v39 }
 0x50a   : > { %1368 = vst.msk [vmem:[%s2399_s18 + $0x30] sm:$0xff] %vm623_vm1, %v1333_v32 }
 0x50f   : > { %v1335_v40 = vpop.f32.mrf.mxu0 }
 0x510   : > { %v1336_v41 = vadd.f32 %v1590_v58, %v1335_v40 }
 0x512   : > { %1369 = vst.msk [vmem:[%s2399_s18 + $0x38] sm:$0xff] %vm623_vm1, %v1336_v41 }
 0x517   : > { %v1338_v4 = vpop.f32.mrf.mxu0 }
 0x518   : > { %v1339_v15 = vadd.f32 %v1590_v58, %v1338_v4 }
 0x51a   : > { %1370 = vst.msk [vmem:[%s2399_s18 + $0x40] sm:$0xff] %vm623_vm1, %v1339_v15 }
 0x51f   : > { %v1341_v6 = vpop.f32.mrf.mxu0 }
 0x520   : > { %v1342_v31 = vadd.f32 %v1590_v58, %v1341_v6 }
 0x522   : > { %1371 = vst.msk [vmem:[%s2399_s18 + $0x48] sm:$0xff] %vm623_vm1, %v1342_v31 }
 0x527   : > { %v1344_v23 = vpop.f32.mrf.mxu0 }
 0x528   : > { %v1345_v47 = vadd.f32 %v1590_v58, %v1344_v23 }
 0x52a   : > { %1372 = vst.msk [vmem:[%s2399_s18 + $0x50] sm:$0xff] %vm623_vm1, %v1345_v47 }
 0x52f   : > { %v1347_v45 = vpop.f32.mrf.mxu0 }
 0x530   : > { %v1348_v57 = vadd.f32 %v1590_v58, %v1347_v45 }
 0x532   : > { %1373 = vst.msk [vmem:[%s2399_s18 + $0x58] sm:$0xff] %vm623_vm1, %v1348_v57 }
 0x537   : > { %v1350_v55 = vpop.f32.mrf.mxu0 }
 0x538   : > { %v1351_v7 = vadd.f32 %v1590_v58, %v1350_v55 }
 0x53a   : > { %1374 = vst.msk [vmem:[%s2399_s18 + $0x60] sm:$0xff] %vm623_vm1, %v1351_v7 }
 0x53f   : > { %v1353_v13 = vpop.f32.mrf.mxu0 }
 0x540   : > { %v1354_v37 = vadd.f32 %v1590_v58, %v1353_v13 }
 0x542   : > { %1375 = vst.msk [vmem:[%s2399_s18 + $0x68] sm:$0xff] %vm623_vm1, %v1354_v37 }
 0x547   : > { %v1356_v2 = vpop.f32.mrf.mxu0 }
 0x548   : > { %v1357_v30 = vadd.f32 %v1590_v58, %v1356_v2 }
 0x54a   : > { %1376 = vst.msk [vmem:[%s2399_s18 + $0x70] sm:$0xff] %vm623_vm1, %v1357_v30 }
 0x54f   : > { %v1359_v46 = vpop.f32.mrf.mxu0 }
 0x550   : > { %v1360_v59 = vadd.f32 %v1590_v58, %v1359_v46 }
 0x552   : > { %1377 = vst.msk [vmem:[%s2399_s18 + $0x78] sm:$0xff] %vm623_vm1, %v1360_v59 }
 0x553 PF: > { %s19_s30 = sadd.s32 1, %s1597_s30  }
 0x554   : > { %p16_p4 = scmp.ge.s32.totalorder %s19_s30, 4  }
 0x556   :  { %18 = sbr.rel (!%p16_p4) target bundleno = 1 (0x1), region = 104 }

</bundles_post_ra>
